<compile_context>
chip_gen: v7x
topology: tpu7x:2x2x1
jax: 0.10.0
libtpu: 0.0.40
codegen_flags: <defaults>
</compile_context>

<pallas_src>
import functools

import jax
import jax.numpy as jnp
from jax import lax
from jax.experimental import pallas as pl
from jax.experimental.pallas import tpu as pltpu

HIDDEN = 32    # nn.GRU(hidden, hidden)  (small stand-in for hidden_size=256)
VOCAB = 64     # output_size (== embedding rows == out.out_features)
LANE = 128
CHUNK = 8      # tokens per grid step
NEG_INF = -1e30


def _round_up(x, m):
    return ((x + m - 1) // m) * m


def decoder_kernel(H, GW, WIW, WOW, T,
                   emb_ref,     # (CHUNK, H)   gathered embedding rows for this chunk
                   h0_ref,      # (1, H)       initial hidden state
                   w_ref,       # (H, 2*WIW + WOW)  packed weight slab (VMEM-resident)
                   b_ref,       # (1, 2*WIW + WOW)  packed bias slab   (VMEM-resident)
                   logp_ref,    # (CHUNK, WOW) per-chunk log-probs (lane-dense, padded)
                   h_ref,       # (1, H)       resident hidden carry / final hidden
                   gi_ref,      # (CHUNK, WIW) scratch: batched input-side gate pre-acts
                   hseq_ref):   # (CHUNK, H)   scratch: h_new rows for this chunk
    c = pl.program_id(0)
    chunk = emb_ref.shape[0]

    # Load the initial hidden state into the VMEM-resident output block once.
    @pl.when(c == 0)
    def _():
        h_ref[...] = h0_ref[...]

    # ---- chunk prologue: batched relu + input-side gate matmul (off the
    # recurrence): gi_all = relu(emb) @ [W_ir|W_iz|W_in] + (b_i + folded b_h r/z)
    x_all = jnp.maximum(emb_ref[...], 0.0)                       # (CHUNK, H)
    gi_ref[...] = (jnp.dot(x_all, w_ref[:, 0:WIW],
                           preferred_element_type=jnp.float32)
                   + b_ref[:, 0:WIW])                            # (CHUNK, WIW)

    w_h = w_ref[:, WIW:2 * WIW]                                  # (H, WIW)
    b_h = b_ref[:, WIW:2 * WIW]                                  # (1, WIW)

    # ---- serial per-token recurrence: only gh = h @ W_h + gate math.
    # Hidden state is carried in vregs (fori carry); h_ref is written once at
    # the end of the chunk.
    def step(i, h):
        gi = gi_ref[pl.ds(i, 1), :]                              # (1, WIW)
        gh = jnp.dot(h, w_h, preferred_element_type=jnp.float32) + b_h
        # Gate sections are 128-lane aligned (offsets 0, GW, 2*GW).
        r = jax.nn.sigmoid(gi[:, 0:H] + gh[:, 0:H])
        z = jax.nn.sigmoid(gi[:, GW:GW + H] + gh[:, GW:GW + H])
        n = jnp.tanh(gi[:, 2 * GW:2 * GW + H] + r * gh[:, 2 * GW:2 * GW + H])
        h_new = (1.0 - z) * n + z * h
        if T % chunk:
            # Mask padded steps in the last chunk so the carried hidden state
            # matches an exact-T-step decode.
            h_new = jnp.where(c * chunk + i < T, h_new, h)
        hseq_ref[pl.ds(i, 1), :] = h_new
        return h_new

    h_final = lax.fori_loop(0, chunk, step, h_ref[...], unroll=True)
    h_ref[...] = h_final

    # ---- chunk epilogue: batched output projection + log_softmax over the
    # padded vocab axis (padded lanes carry a -1e30 bias -> never win the max,
    # contribute exp()=0), then one lane/sublane-dense store.
    logits = (jnp.dot(hseq_ref[...], w_ref[:, 2 * WIW:2 * WIW + WOW],
                      preferred_element_type=jnp.float32)
              + b_ref[:, 2 * WIW:2 * WIW + WOW])                 # (CHUNK, WOW)
    m = jnp.max(logits, axis=-1, keepdims=True)
    s = jnp.sum(jnp.exp(logits - m), axis=-1, keepdims=True)
    logp_ref[...] = logits - m - jnp.log(s)


def _pad_cols(a, width, fill=0.0):
    pad = width - a.shape[-1]
    if pad <= 0:
        return a
    return jnp.concatenate(
        [a, jnp.full(a.shape[:-1] + (pad,), fill, a.dtype)], axis=-1)


def pack_params(params, H, V):
    """Fuse per-gate weights/biases into one weight slab and one bias slab.

    Each gate gets its own 128-lane-aligned section of width GW = round_up(H, 128):
      weight slab (H, 2*WIW + WOW) = [ w_ir|pad w_iz|pad w_in|pad
                                       w_hr|pad w_hz|pad w_hn|pad   w_out|pad ]
      bias   slab (1, 2*WIW + WOW) = [ b_ir+b_hr | b_iz+b_hz | b_in
                                       0 | 0 | b_hn           | b_out | -1e30 pad ]
    """
    (w_ir, w_iz, w_in, w_hr, w_hz, w_hn,
     b_ir, b_iz, b_in, b_hr, b_hz, b_hn, w_out, b_out) = params

    GW = _round_up(H, LANE)            # per-gate (128-aligned) section width
    WIW = 3 * GW                       # width of each fused gate-matmul section
    WOW = _round_up(V, LANE)           # padded width of the output section

    w_i = jnp.concatenate([_pad_cols(w_ir, GW), _pad_cols(w_iz, GW),
                           _pad_cols(w_in, GW)], axis=1)
    w_h = jnp.concatenate([_pad_cols(w_hr, GW), _pad_cols(w_hz, GW),
                           _pad_cols(w_hn, GW)], axis=1)
    w_o = _pad_cols(w_out, WOW)
    wslab = jnp.concatenate([w_i, w_h, w_o], axis=1)             # (H, 2*WIW + WOW)

    # Fold additive r/z biases; b_hn must stay on the hidden side (inside r*(...)).
    zeros = jnp.zeros((1, GW), jnp.float32)
    b_i = jnp.concatenate([_pad_cols(b_ir + b_hr, GW), _pad_cols(b_iz + b_hz, GW),
                           _pad_cols(b_in, GW)], axis=1)
    b_h = jnp.concatenate([zeros, zeros, _pad_cols(b_hn, GW)], axis=1)
    b_o = _pad_cols(b_out, WOW, fill=NEG_INF)                    # mask padded logits
    bslab = jnp.concatenate([b_i, b_h, b_o], axis=1)             # (1, 2*WIW + WOW)

    return wslab, bslab, GW, WIW, WOW


def decoder_decode(tokens, emb_table, hidden, wslab, bslab, GW, WIW, WOW,
                   chunk=CHUNK):
    """Run len(tokens) decoder steps in ONE pallas_call (weights stay resident).

    tokens: int32 (T,); emb_table: (V, H); hidden: (1, 1, H).
    Returns (log_probs (T, V), hidden (1, 1, H)).
    """
    V, H = emb_table.shape
    T = int(tokens.shape[0])
    T_pad = _round_up(T, chunk)
    slab_w = 2 * WIW + WOW

    # Gather all embedding rows once in the wrapper: one sublane-dense blocked
    # input instead of T tiny data-dependent 128-byte DMAs.
    if T_pad != T:
        tokens_p = jnp.concatenate(
            [tokens, jnp.zeros((T_pad - T,), tokens.dtype)])
    else:
        tokens_p = tokens
    emb_rows = jnp.take(emb_table, tokens_p, axis=0)             # (T_pad, H)

    kernel = functools.partial(decoder_kernel, H, GW, WIW, WOW, T)

    logp_pad, h_out = pl.pallas_call(
        kernel,
        out_shape=(jax.ShapeDtypeStruct((T_pad, WOW), jnp.float32),
                   jax.ShapeDtypeStruct((1, H), jnp.float32)),
        grid_spec=pltpu.PrefetchScalarGridSpec(
            num_scalar_prefetch=0,
            grid=(T_pad // chunk,),
            in_specs=[
                # Per-chunk embedding rows (plain blocked spec, no gather DMA).
                pl.BlockSpec((chunk, H), lambda c: (c, 0)),
                # Initial hidden + parameter slabs: constant index_map -> one
                # DMA each, VMEM-resident for the whole decode loop.
                pl.BlockSpec((1, H), lambda c: (0, 0)),
                pl.BlockSpec((H, slab_w), lambda c: (0, 0)),
                pl.BlockSpec((1, slab_w), lambda c: (0, 0)),
            ],
            out_specs=(
                pl.BlockSpec((chunk, WOW), lambda c: (c, 0)),    # lane+sublane dense
                pl.BlockSpec((1, H), lambda c: (0, 0)),          # resident hidden carry
            ),
            scratch_shapes=[
                pltpu.VMEM((chunk, WIW), jnp.float32),           # gi_all
                pltpu.VMEM((chunk, H), jnp.float32),             # h_new rows
            ],
        ),
        compiler_params=pltpu.CompilerParams(
            dimension_semantics=("arbitrary",)),   # sequential: hidden carries across chunks
    )(emb_rows, hidden.reshape(1, H), wslab, bslab)

    # Strip lane/step padding; match PyTorch shapes.
    return logp_pad[:T, :V], h_out.reshape(1, 1, H)


def decoder_step(tok, emb_table, hidden, wslab, bslab, GW, WIW, WOW):
    """Exact DecoderRNN.forward semantics: tok (1,) int32 -> ((1, V), (1, 1, H))."""
    return decoder_decode(tok, emb_table, hidden, wslab, bslab, GW, WIW, WOW)


# ----------------------------- pure-JAX reference -----------------------------

def reference_step(tok, emb_table, hidden, params):
    (w_ir, w_iz, w_in, w_hr, w_hz, w_hn,
     b_ir, b_iz, b_in, b_hr, b_hz, b_hn, w_out, b_out) = params
    x = jnp.maximum(emb_table[tok[0]], 0.0)[None, :]
    h = hidden.reshape(1, -1)
    r = jax.nn.sigmoid(x @ w_ir + b_ir + h @ w_hr + b_hr)
    z = jax.nn.sigmoid(x @ w_iz + b_iz + h @ w_hz + b_hz)
    n = jnp.tanh(x @ w_in + b_in + r * (h @ w_hn + b_hn))
    h_new = (1.0 - z) * n + z * h
    logits = h_new @ w_out + b_out
    return jax.nn.log_softmax(logits, axis=-1), h_new.reshape(1, 1, -1)


def reference_decode(tokens, emb_table, hidden, params):
    logps, h = [], hidden
    for i in range(tokens.shape[0]):
        lp, h = reference_step(tokens[i:i + 1], emb_table, h, params)
        logps.append(lp)
    return jnp.concatenate(logps, axis=0), h


def init_params(key, hidden, vocab):
    keys = jax.random.split(key, 16)
    scale = 1.0 / jnp.sqrt(hidden)
    emb_table = jax.random.normal(keys[0], (vocab, hidden), jnp.float32)
    gate_w = [scale * jax.random.normal(keys[1 + i], (hidden, hidden), jnp.float32)
              for i in range(6)]
    gate_b = [scale * jax.random.normal(keys[7 + i], (1, hidden), jnp.float32)
              for i in range(6)]
    w_out = scale * jax.random.normal(keys[13], (hidden, vocab), jnp.float32)
    b_out = scale * jax.random.normal(keys[14], (1, vocab), jnp.float32)
    params = tuple(gate_w) + tuple(gate_b) + (w_out, b_out)
    return emb_table, params


if __name__ == "__main__":
    key = jax.random.PRNGKey(0)
    k_param, k_hid = jax.random.split(key)

    emb_table, params = init_params(k_param, HIDDEN, VOCAB)
    wslab, bslab, GW, WIW, WOW = pack_params(params, HIDDEN, VOCAB)
    hidden = jax.random.normal(k_hid, (1, 1, HIDDEN), jnp.float32)

    # (1) single step — exact DecoderRNN.forward semantics (padded steps in the
    # chunk are masked so the returned hidden matches one real step).
    tok = jnp.array([5], dtype=jnp.int32)
    logp, h_new = decoder_step(tok, emb_table, hidden, wslab, bslab, GW, WIW, WOW)
    jax.block_until_ready((logp, h_new))
    ref_logp, ref_h = reference_step(tok, emb_table, hidden, params)
    assert logp.shape == (1, VOCAB) and h_new.shape == (1, 1, HIDDEN)
    assert jnp.allclose(logp, ref_logp, atol=1e-4, rtol=1e-4)
    assert jnp.allclose(h_new, ref_h, atol=1e-4, rtol=1e-4)

    # (2) multi-step decode: the whole time loop runs inside one kernel launch
    # (weights DMA'd once, hidden state never leaves VMEM between steps, CHUNK
    # tokens processed per grid step with batched non-recurrent work).
    # TODO(synk): fully autoregressive (argmax-fed) decoding would need the
    # next-token selection inside the kernel; here the token sequence is given.
    tokens = jnp.array([5, 17, 3, 42, 0, 63, 8, 21], dtype=jnp.int32)
    logp_seq, h_seq = decoder_decode(tokens, emb_table, hidden,
                                     wslab, bslab, GW, WIW, WOW)
    jax.block_until_ready((logp_seq, h_seq))
    ref_seq, ref_h_seq = reference_decode(tokens, emb_table, hidden, params)
    assert logp_seq.shape == (tokens.shape[0], VOCAB)
    assert jnp.allclose(logp_seq, ref_seq, atol=1e-4, rtol=1e-4)
    assert jnp.allclose(h_seq, ref_h_seq, atol=1e-4, rtol=1e-4)

    # (3) a length that does NOT divide CHUNK, to exercise the padded-step mask.
    tokens_odd = jnp.array([9, 1, 33, 50, 7], dtype=jnp.int32)
    logp_odd, h_odd = decoder_decode(tokens_odd, emb_table, hidden,
                                     wslab, bslab, GW, WIW, WOW)
    jax.block_until_ready((logp_odd, h_odd))
    ref_odd, ref_h_odd = reference_decode(tokens_odd, emb_table, hidden, params)
    assert jnp.allclose(logp_odd, ref_odd, atol=1e-4, rtol=1e-4)
    assert jnp.allclose(h_odd, ref_h_odd, atol=1e-4, rtol=1e-4)

    print("KERNEL_OK")
</pallas_src>

<mosaic_0001>
module attributes {stable_mosaic.version = 11 : i64} {
  func.func @decoder_kernel(%arg0: i32, %arg1: memref<8x32xf32, #tpu.memory_space<vmem>>, %arg2: memref<1x32xf32, #tpu.memory_space<vmem>>, %arg3: memref<32x896xf32, #tpu.memory_space<vmem>>, %arg4: memref<1x896xf32, #tpu.memory_space<vmem>>, %arg5: memref<8x128xf32, #tpu.memory_space<vmem>>, %arg6: memref<1x32xf32, #tpu.memory_space<vmem>>, %arg7: memref<8x384xf32, #tpu.memory_space<vmem>>, %arg8: memref<8x32xf32, #tpu.memory_space<vmem>>) attributes {dimension_semantics = [#tpu.dimension_semantics<arbitrary>], iteration_bounds = array<i64: 1>, scalar_prefetch = 0 : i64, scratch_operands = 2 : i64, tpu.core_type = #tpu.core_type<tc>, window_params = [{transform_indices = @transform_0, window_bounds = array<i64: 8, 32>}, {pipeline_mode = #tpu.pipeline_mode<synchronous>, transform_indices = @transform_1, window_bounds = array<i64: 1, 32>}, {pipeline_mode = #tpu.pipeline_mode<synchronous>, transform_indices = @transform_2, window_bounds = array<i64: 32, 896>}, {pipeline_mode = #tpu.pipeline_mode<synchronous>, transform_indices = @transform_3, window_bounds = array<i64: 1, 896>}, {transform_indices = @transform_4, window_bounds = array<i64: 8, 128>}, {pipeline_mode = #tpu.pipeline_mode<synchronous>, transform_indices = @transform_5, window_bounds = array<i64: 1, 32>}]} {
    %c0_i32 = arith.constant 0 : i32
    %0 = arith.cmpi eq, %arg0, %c0_i32 : i32
    %1 = arith.extui %0 : i1 to i32
    %c0_i32_0 = arith.constant 0 : i32
    %2 = arith.cmpi ne, %1, %c0_i32_0 : i32
    scf.if %2 {
      %c0_91 = arith.constant 0 : index
      %c0_92 = arith.constant 0 : index
      %323 = vector.load %arg2[%c0_91, %c0_92] : memref<1x32xf32, #tpu.memory_space<vmem>>, vector<1x32xf32>
      %c0_93 = arith.constant 0 : index
      %c0_94 = arith.constant 0 : index
      %324 = vector.load %arg6[%c0_93, %c0_94] : memref<1x32xf32, #tpu.memory_space<vmem>>, vector<1x32xf32>
      tpu.vector_store %arg6[%c0_93, %c0_94], %323 {strides = array<i32>} : memref<1x32xf32, #tpu.memory_space<vmem>>, vector<1x32xf32>,
    } else {
    }
    %c0 = arith.constant 0 : index
    %c0_1 = arith.constant 0 : index
    %3 = vector.load %arg1[%c0, %c0_1] : memref<8x32xf32, #tpu.memory_space<vmem>>, vector<8x32xf32>
    %cst = arith.constant 0.000000e+00 : f32
    %4 = vector.broadcast %cst : f32 to vector<8x32xf32>
    %5 = arith.maximumf %3, %4 : vector<8x32xf32>
    %c0_2 = arith.constant 0 : index
    %c0_3 = arith.constant 0 : index
    %6 = vector.load %arg3[%c0_2, %c0_3] : memref<32x896xf32, #tpu.memory_space<vmem>>, vector<32x384xf32>
    %cst_4 = arith.constant dense<0.000000e+00> : vector<8x384xf32>
    %7 = tpu.matmul %5, %6, %cst_4 {dimension_numbers = #tpu.dot_dimension_numbers<[1], [0], [0], [1], [0, 0, 1, 1], [], []>} : vector<8x32xf32>, vector<32x384xf32>, vector<8x384xf32> -> vector<8x384xf32>
    %c0_5 = arith.constant 0 : index
    %c0_6 = arith.constant 0 : index
    %8 = vector.load %arg4[%c0_5, %c0_6] : memref<1x896xf32, #tpu.memory_space<vmem>>, vector<1x384xf32>
    %9 = vector.broadcast %8 : vector<1x384xf32> to vector<8x384xf32>
    %10 = arith.addf %7, %9 : vector<8x384xf32>
    %c0_7 = arith.constant 0 : index
    %c0_8 = arith.constant 0 : index
    %11 = vector.load %arg7[%c0_7, %c0_8] : memref<8x384xf32, #tpu.memory_space<vmem>>, vector<8x384xf32>
    tpu.vector_store %arg7[%c0_7, %c0_8], %10 {strides = array<i32>} : memref<8x384xf32, #tpu.memory_space<vmem>>, vector<8x384xf32>,
    %c0_9 = arith.constant 0 : index
    %c384 = arith.constant 384 : index
    %12 = vector.load %arg3[%c0_9, %c384] : memref<32x896xf32, #tpu.memory_space<vmem>>, vector<32x384xf32>
    %c0_10 = arith.constant 0 : index
    %c384_11 = arith.constant 384 : index
    %13 = vector.load %arg4[%c0_10, %c384_11] : memref<1x896xf32, #tpu.memory_space<vmem>>, vector<1x384xf32>
    %c0_12 = arith.constant 0 : index
    %c0_13 = arith.constant 0 : index
    %14 = vector.load %arg6[%c0_12, %c0_13] : memref<1x32xf32, #tpu.memory_space<vmem>>, vector<1x32xf32>
    %c0_i32_14 = arith.constant 0 : i32
    %15 = arith.index_cast %c0_i32_14 : i32 to index
    %c0_15 = arith.constant 0 : index
    %16 = vector.load %arg7[%15, %c0_15] : memref<8x384xf32, #tpu.memory_space<vmem>>, vector<1x384xf32>
    %cst_16 = arith.constant dense<0.000000e+00> : vector<1x384xf32>
    %17 = tpu.matmul %14, %12, %cst_16 {dimension_numbers = #tpu.dot_dimension_numbers<[1], [0], [0], [1], [0, 0, 1, 1], [], []>} : vector<1x32xf32>, vector<32x384xf32>, vector<1x384xf32> -> vector<1x384xf32>
    %18 = arith.addf %17, %13 : vector<1x384xf32>
    %19 = vector.extract_strided_slice %16 {offsets = [0, 0], sizes = [1, 32], strides = [1, 1]} : vector<1x384xf32> to vector<1x32xf32>
    %20 = vector.extract_strided_slice %18 {offsets = [0, 0], sizes = [1, 32], strides = [1, 1]} : vector<1x384xf32> to vector<1x32xf32>
    %21 = arith.addf %19, %20 : vector<1x32xf32>
    %22 = arith.negf %21 : vector<1x32xf32>
    %23 = math.exp %22 : vector<1x32xf32>
    %cst_17 = arith.constant 1.000000e+00 : f32
    %24 = vector.broadcast %cst_17 : f32 to vector<1x32xf32>
    %25 = arith.addf %24, %23 : vector<1x32xf32>
    %26 = arith.divf %24, %25 : vector<1x32xf32>
    %27 = vector.extract_strided_slice %16 {offsets = [0, 128], sizes = [1, 32], strides = [1, 1]} : vector<1x384xf32> to vector<1x32xf32>
    %28 = vector.extract_strided_slice %18 {offsets = [0, 128], sizes = [1, 32], strides = [1, 1]} : vector<1x384xf32> to vector<1x32xf32>
    %29 = arith.addf %27, %28 : vector<1x32xf32>
    %30 = arith.negf %29 : vector<1x32xf32>
    %31 = math.exp %30 : vector<1x32xf32>
    %cst_18 = arith.constant 1.000000e+00 : f32
    %32 = vector.broadcast %cst_18 : f32 to vector<1x32xf32>
    %33 = arith.addf %32, %31 : vector<1x32xf32>
    %34 = arith.divf %32, %33 : vector<1x32xf32>
    %35 = vector.extract_strided_slice %16 {offsets = [0, 256], sizes = [1, 32], strides = [1, 1]} : vector<1x384xf32> to vector<1x32xf32>
    %36 = vector.extract_strided_slice %18 {offsets = [0, 256], sizes = [1, 32], strides = [1, 1]} : vector<1x384xf32> to vector<1x32xf32>
    %37 = arith.mulf %26, %36 : vector<1x32xf32>
    %38 = arith.addf %35, %37 : vector<1x32xf32>
    %39 = math.tanh %38 : vector<1x32xf32>
    %cst_19 = arith.constant 1.000000e+00 : f32
    %40 = vector.broadcast %cst_19 : f32 to vector<1x32xf32>
    %41 = arith.subf %40, %34 : vector<1x32xf32>
    %42 = arith.mulf %41, %39 : vector<1x32xf32>
    %43 = arith.mulf %34, %14 : vector<1x32xf32>
    %44 = arith.addf %42, %43 : vector<1x32xf32>
    %c8_i32 = arith.constant 8 : i32
    %45 = arith.muli %arg0, %c8_i32 : i32
    %46 = arith.addi %45, %c0_i32_14 : i32
    %c1_i32 = arith.constant 1 : i32
    %47 = arith.cmpi slt, %46, %c1_i32 : i32
    %48 = arith.select %47, %44, %14 : vector<1x32xf32>
    %49 = arith.index_cast %c0_i32_14 : i32 to index
    %c0_20 = arith.constant 0 : index
    %50 = vector.load %arg8[%49, %c0_20] : memref<8x32xf32, #tpu.memory_space<vmem>>, vector<1x32xf32>
    tpu.vector_store %arg8[%49, %c0_20], %48 {strides = array<i32>} : memref<8x32xf32, #tpu.memory_space<vmem>>, vector<1x32xf32>,
    %c1_i32_21 = arith.constant 1 : i32
    %51 = arith.index_cast %c1_i32_21 : i32 to index
    %c0_22 = arith.constant 0 : index
    %52 = vector.load %arg7[%51, %c0_22] : memref<8x384xf32, #tpu.memory_space<vmem>>, vector<1x384xf32>
    %cst_23 = arith.constant dense<0.000000e+00> : vector<1x384xf32>
    %53 = tpu.matmul %48, %12, %cst_23 {dimension_numbers = #tpu.dot_dimension_numbers<[1], [0], [0], [1], [0, 0, 1, 1], [], []>} : vector<1x32xf32>, vector<32x384xf32>, vector<1x384xf32> -> vector<1x384xf32>
    %54 = arith.addf %53, %13 : vector<1x384xf32>
    %55 = vector.extract_strided_slice %52 {offsets = [0, 0], sizes = [1, 32], strides = [1, 1]} : vector<1x384xf32> to vector<1x32xf32>
    %56 = vector.extract_strided_slice %54 {offsets = [0, 0], sizes = [1, 32], strides = [1, 1]} : vector<1x384xf32> to vector<1x32xf32>
    %57 = arith.addf %55, %56 : vector<1x32xf32>
    %58 = arith.negf %57 : vector<1x32xf32>
    %59 = math.exp %58 : vector<1x32xf32>
    %cst_24 = arith.constant 1.000000e+00 : f32
    %60 = vector.broadcast %cst_24 : f32 to vector<1x32xf32>
    %61 = arith.addf %60, %59 : vector<1x32xf32>
    %62 = arith.divf %60, %61 : vector<1x32xf32>
    %63 = vector.extract_strided_slice %52 {offsets = [0, 128], sizes = [1, 32], strides = [1, 1]} : vector<1x384xf32> to vector<1x32xf32>
    %64 = vector.extract_strided_slice %54 {offsets = [0, 128], sizes = [1, 32], strides = [1, 1]} : vector<1x384xf32> to vector<1x32xf32>
    %65 = arith.addf %63, %64 : vector<1x32xf32>
    %66 = arith.negf %65 : vector<1x32xf32>
    %67 = math.exp %66 : vector<1x32xf32>
    %cst_25 = arith.constant 1.000000e+00 : f32
    %68 = vector.broadcast %cst_25 : f32 to vector<1x32xf32>
    %69 = arith.addf %68, %67 : vector<1x32xf32>
    %70 = arith.divf %68, %69 : vector<1x32xf32>
    %71 = vector.extract_strided_slice %52 {offsets = [0, 256], sizes = [1, 32], strides = [1, 1]} : vector<1x384xf32> to vector<1x32xf32>
    %72 = vector.extract_strided_slice %54 {offsets = [0, 256], sizes = [1, 32], strides = [1, 1]} : vector<1x384xf32> to vector<1x32xf32>
    %73 = arith.mulf %62, %72 : vector<1x32xf32>
    %74 = arith.addf %71, %73 : vector<1x32xf32>
    %75 = math.tanh %74 : vector<1x32xf32>
    %cst_26 = arith.constant 1.000000e+00 : f32
    %76 = vector.broadcast %cst_26 : f32 to vector<1x32xf32>
    %77 = arith.subf %76, %70 : vector<1x32xf32>
    %78 = arith.mulf %77, %75 : vector<1x32xf32>
    %79 = arith.mulf %70, %48 : vector<1x32xf32>
    %80 = arith.addf %78, %79 : vector<1x32xf32>
    %c8_i32_27 = arith.constant 8 : i32
    %81 = arith.muli %arg0, %c8_i32_27 : i32
    %82 = arith.addi %81, %c1_i32_21 : i32
    %c1_i32_28 = arith.constant 1 : i32
    %83 = arith.cmpi slt, %82, %c1_i32_28 : i32
    %84 = arith.select %83, %80, %48 : vector<1x32xf32>
    %85 = arith.index_cast %c1_i32_21 : i32 to index
    %c0_29 = arith.constant 0 : index
    %86 = vector.load %arg8[%85, %c0_29] : memref<8x32xf32, #tpu.memory_space<vmem>>, vector<1x32xf32>
    tpu.vector_store %arg8[%85, %c0_29], %84 {strides = array<i32>} : memref<8x32xf32, #tpu.memory_space<vmem>>, vector<1x32xf32>,
    %c2_i32 = arith.constant 2 : i32
    %87 = arith.index_cast %c2_i32 : i32 to index
    %c0_30 = arith.constant 0 : index
    %88 = vector.load %arg7[%87, %c0_30] : memref<8x384xf32, #tpu.memory_space<vmem>>, vector<1x384xf32>
    %cst_31 = arith.constant dense<0.000000e+00> : vector<1x384xf32>
    %89 = tpu.matmul %84, %12, %cst_31 {dimension_numbers = #tpu.dot_dimension_numbers<[1], [0], [0], [1], [0, 0, 1, 1], [], []>} : vector<1x32xf32>, vector<32x384xf32>, vector<1x384xf32> -> vector<1x384xf32>
    %90 = arith.addf %89, %13 : vector<1x384xf32>
    %91 = vector.extract_strided_slice %88 {offsets = [0, 0], sizes = [1, 32], strides = [1, 1]} : vector<1x384xf32> to vector<1x32xf32>
    %92 = vector.extract_strided_slice %90 {offsets = [0, 0], sizes = [1, 32], strides = [1, 1]} : vector<1x384xf32> to vector<1x32xf32>
    %93 = arith.addf %91, %92 : vector<1x32xf32>
    %94 = arith.negf %93 : vector<1x32xf32>
    %95 = math.exp %94 : vector<1x32xf32>
    %cst_32 = arith.constant 1.000000e+00 : f32
    %96 = vector.broadcast %cst_32 : f32 to vector<1x32xf32>
    %97 = arith.addf %96, %95 : vector<1x32xf32>
    %98 = arith.divf %96, %97 : vector<1x32xf32>
    %99 = vector.extract_strided_slice %88 {offsets = [0, 128], sizes = [1, 32], strides = [1, 1]} : vector<1x384xf32> to vector<1x32xf32>
    %100 = vector.extract_strided_slice %90 {offsets = [0, 128], sizes = [1, 32], strides = [1, 1]} : vector<1x384xf32> to vector<1x32xf32>
    %101 = arith.addf %99, %100 : vector<1x32xf32>
    %102 = arith.negf %101 : vector<1x32xf32>
    %103 = math.exp %102 : vector<1x32xf32>
    %cst_33 = arith.constant 1.000000e+00 : f32
    %104 = vector.broadcast %cst_33 : f32 to vector<1x32xf32>
    %105 = arith.addf %104, %103 : vector<1x32xf32>
    %106 = arith.divf %104, %105 : vector<1x32xf32>
    %107 = vector.extract_strided_slice %88 {offsets = [0, 256], sizes = [1, 32], strides = [1, 1]} : vector<1x384xf32> to vector<1x32xf32>
    %108 = vector.extract_strided_slice %90 {offsets = [0, 256], sizes = [1, 32], strides = [1, 1]} : vector<1x384xf32> to vector<1x32xf32>
    %109 = arith.mulf %98, %108 : vector<1x32xf32>
    %110 = arith.addf %107, %109 : vector<1x32xf32>
    %111 = math.tanh %110 : vector<1x32xf32>
    %cst_34 = arith.constant 1.000000e+00 : f32
    %112 = vector.broadcast %cst_34 : f32 to vector<1x32xf32>
    %113 = arith.subf %112, %106 : vector<1x32xf32>
    %114 = arith.mulf %113, %111 : vector<1x32xf32>
    %115 = arith.mulf %106, %84 : vector<1x32xf32>
    %116 = arith.addf %114, %115 : vector<1x32xf32>
    %c8_i32_35 = arith.constant 8 : i32
    %117 = arith.muli %arg0, %c8_i32_35 : i32
    %118 = arith.addi %117, %c2_i32 : i32
    %c1_i32_36 = arith.constant 1 : i32
    %119 = arith.cmpi slt, %118, %c1_i32_36 : i32
    %120 = arith.select %119, %116, %84 : vector<1x32xf32>
    %121 = arith.index_cast %c2_i32 : i32 to index
    %c0_37 = arith.constant 0 : index
    %122 = vector.load %arg8[%121, %c0_37] : memref<8x32xf32, #tpu.memory_space<vmem>>, vector<1x32xf32>
    tpu.vector_store %arg8[%121, %c0_37], %120 {strides = array<i32>} : memref<8x32xf32, #tpu.memory_space<vmem>>, vector<1x32xf32>,
    %c3_i32 = arith.constant 3 : i32
    %123 = arith.index_cast %c3_i32 : i32 to index
    %c0_38 = arith.constant 0 : index
    %124 = vector.load %arg7[%123, %c0_38] : memref<8x384xf32, #tpu.memory_space<vmem>>, vector<1x384xf32>
    %cst_39 = arith.constant dense<0.000000e+00> : vector<1x384xf32>
    %125 = tpu.matmul %120, %12, %cst_39 {dimension_numbers = #tpu.dot_dimension_numbers<[1], [0], [0], [1], [0, 0, 1, 1], [], []>} : vector<1x32xf32>, vector<32x384xf32>, vector<1x384xf32> -> vector<1x384xf32>
    %126 = arith.addf %125, %13 : vector<1x384xf32>
    %127 = vector.extract_strided_slice %124 {offsets = [0, 0], sizes = [1, 32], strides = [1, 1]} : vector<1x384xf32> to vector<1x32xf32>
    %128 = vector.extract_strided_slice %126 {offsets = [0, 0], sizes = [1, 32], strides = [1, 1]} : vector<1x384xf32> to vector<1x32xf32>
    %129 = arith.addf %127, %128 : vector<1x32xf32>
    %130 = arith.negf %129 : vector<1x32xf32>
    %131 = math.exp %130 : vector<1x32xf32>
    %cst_40 = arith.constant 1.000000e+00 : f32
    %132 = vector.broadcast %cst_40 : f32 to vector<1x32xf32>
    %133 = arith.addf %132, %131 : vector<1x32xf32>
    %134 = arith.divf %132, %133 : vector<1x32xf32>
    %135 = vector.extract_strided_slice %124 {offsets = [0, 128], sizes = [1, 32], strides = [1, 1]} : vector<1x384xf32> to vector<1x32xf32>
    %136 = vector.extract_strided_slice %126 {offsets = [0, 128], sizes = [1, 32], strides = [1, 1]} : vector<1x384xf32> to vector<1x32xf32>
    %137 = arith.addf %135, %136 : vector<1x32xf32>
    %138 = arith.negf %137 : vector<1x32xf32>
    %139 = math.exp %138 : vector<1x32xf32>
    %cst_41 = arith.constant 1.000000e+00 : f32
    %140 = vector.broadcast %cst_41 : f32 to vector<1x32xf32>
    %141 = arith.addf %140, %139 : vector<1x32xf32>
    %142 = arith.divf %140, %141 : vector<1x32xf32>
    %143 = vector.extract_strided_slice %124 {offsets = [0, 256], sizes = [1, 32], strides = [1, 1]} : vector<1x384xf32> to vector<1x32xf32>
    %144 = vector.extract_strided_slice %126 {offsets = [0, 256], sizes = [1, 32], strides = [1, 1]} : vector<1x384xf32> to vector<1x32xf32>
    %145 = arith.mulf %134, %144 : vector<1x32xf32>
    %146 = arith.addf %143, %145 : vector<1x32xf32>
    %147 = math.tanh %146 : vector<1x32xf32>
    %cst_42 = arith.constant 1.000000e+00 : f32
    %148 = vector.broadcast %cst_42 : f32 to vector<1x32xf32>
    %149 = arith.subf %148, %142 : vector<1x32xf32>
    %150 = arith.mulf %149, %147 : vector<1x32xf32>
    %151 = arith.mulf %142, %120 : vector<1x32xf32>
    %152 = arith.addf %150, %151 : vector<1x32xf32>
    %c8_i32_43 = arith.constant 8 : i32
    %153 = arith.muli %arg0, %c8_i32_43 : i32
    %154 = arith.addi %153, %c3_i32 : i32
    %c1_i32_44 = arith.constant 1 : i32
    %155 = arith.cmpi slt, %154, %c1_i32_44 : i32
    %156 = arith.select %155, %152, %120 : vector<1x32xf32>
    %157 = arith.index_cast %c3_i32 : i32 to index
    %c0_45 = arith.constant 0 : index
    %158 = vector.load %arg8[%157, %c0_45] : memref<8x32xf32, #tpu.memory_space<vmem>>, vector<1x32xf32>
    tpu.vector_store %arg8[%157, %c0_45], %156 {strides = array<i32>} : memref<8x32xf32, #tpu.memory_space<vmem>>, vector<1x32xf32>,
    %c4_i32 = arith.constant 4 : i32
    %159 = arith.index_cast %c4_i32 : i32 to index
    %c0_46 = arith.constant 0 : index
    %160 = vector.load %arg7[%159, %c0_46] : memref<8x384xf32, #tpu.memory_space<vmem>>, vector<1x384xf32>
    %cst_47 = arith.constant dense<0.000000e+00> : vector<1x384xf32>
    %161 = tpu.matmul %156, %12, %cst_47 {dimension_numbers = #tpu.dot_dimension_numbers<[1], [0], [0], [1], [0, 0, 1, 1], [], []>} : vector<1x32xf32>, vector<32x384xf32>, vector<1x384xf32> -> vector<1x384xf32>
    %162 = arith.addf %161, %13 : vector<1x384xf32>
    %163 = vector.extract_strided_slice %160 {offsets = [0, 0], sizes = [1, 32], strides = [1, 1]} : vector<1x384xf32> to vector<1x32xf32>
    %164 = vector.extract_strided_slice %162 {offsets = [0, 0], sizes = [1, 32], strides = [1, 1]} : vector<1x384xf32> to vector<1x32xf32>
    %165 = arith.addf %163, %164 : vector<1x32xf32>
    %166 = arith.negf %165 : vector<1x32xf32>
    %167 = math.exp %166 : vector<1x32xf32>
    %cst_48 = arith.constant 1.000000e+00 : f32
    %168 = vector.broadcast %cst_48 : f32 to vector<1x32xf32>
    %169 = arith.addf %168, %167 : vector<1x32xf32>
    %170 = arith.divf %168, %169 : vector<1x32xf32>
    %171 = vector.extract_strided_slice %160 {offsets = [0, 128], sizes = [1, 32], strides = [1, 1]} : vector<1x384xf32> to vector<1x32xf32>
    %172 = vector.extract_strided_slice %162 {offsets = [0, 128], sizes = [1, 32], strides = [1, 1]} : vector<1x384xf32> to vector<1x32xf32>
    %173 = arith.addf %171, %172 : vector<1x32xf32>
    %174 = arith.negf %173 : vector<1x32xf32>
    %175 = math.exp %174 : vector<1x32xf32>
    %cst_49 = arith.constant 1.000000e+00 : f32
    %176 = vector.broadcast %cst_49 : f32 to vector<1x32xf32>
    %177 = arith.addf %176, %175 : vector<1x32xf32>
    %178 = arith.divf %176, %177 : vector<1x32xf32>
    %179 = vector.extract_strided_slice %160 {offsets = [0, 256], sizes = [1, 32], strides = [1, 1]} : vector<1x384xf32> to vector<1x32xf32>
    %180 = vector.extract_strided_slice %162 {offsets = [0, 256], sizes = [1, 32], strides = [1, 1]} : vector<1x384xf32> to vector<1x32xf32>
    %181 = arith.mulf %170, %180 : vector<1x32xf32>
    %182 = arith.addf %179, %181 : vector<1x32xf32>
    %183 = math.tanh %182 : vector<1x32xf32>
    %cst_50 = arith.constant 1.000000e+00 : f32
    %184 = vector.broadcast %cst_50 : f32 to vector<1x32xf32>
    %185 = arith.subf %184, %178 : vector<1x32xf32>
    %186 = arith.mulf %185, %183 : vector<1x32xf32>
    %187 = arith.mulf %178, %156 : vector<1x32xf32>
    %188 = arith.addf %186, %187 : vector<1x32xf32>
    %c8_i32_51 = arith.constant 8 : i32
    %189 = arith.muli %arg0, %c8_i32_51 : i32
    %190 = arith.addi %189, %c4_i32 : i32
    %c1_i32_52 = arith.constant 1 : i32
    %191 = arith.cmpi slt, %190, %c1_i32_52 : i32
    %192 = arith.select %191, %188, %156 : vector<1x32xf32>
    %193 = arith.index_cast %c4_i32 : i32 to index
    %c0_53 = arith.constant 0 : index
    %194 = vector.load %arg8[%193, %c0_53] : memref<8x32xf32, #tpu.memory_space<vmem>>, vector<1x32xf32>
    tpu.vector_store %arg8[%193, %c0_53], %192 {strides = array<i32>} : memref<8x32xf32, #tpu.memory_space<vmem>>, vector<1x32xf32>,
    %c5_i32 = arith.constant 5 : i32
    %195 = arith.index_cast %c5_i32 : i32 to index
    %c0_54 = arith.constant 0 : index
    %196 = vector.load %arg7[%195, %c0_54] : memref<8x384xf32, #tpu.memory_space<vmem>>, vector<1x384xf32>
    %cst_55 = arith.constant dense<0.000000e+00> : vector<1x384xf32>
    %197 = tpu.matmul %192, %12, %cst_55 {dimension_numbers = #tpu.dot_dimension_numbers<[1], [0], [0], [1], [0, 0, 1, 1], [], []>} : vector<1x32xf32>, vector<32x384xf32>, vector<1x384xf32> -> vector<1x384xf32>
    %198 = arith.addf %197, %13 : vector<1x384xf32>
    %199 = vector.extract_strided_slice %196 {offsets = [0, 0], sizes = [1, 32], strides = [1, 1]} : vector<1x384xf32> to vector<1x32xf32>
    %200 = vector.extract_strided_slice %198 {offsets = [0, 0], sizes = [1, 32], strides = [1, 1]} : vector<1x384xf32> to vector<1x32xf32>
    %201 = arith.addf %199, %200 : vector<1x32xf32>
    %202 = arith.negf %201 : vector<1x32xf32>
    %203 = math.exp %202 : vector<1x32xf32>
    %cst_56 = arith.constant 1.000000e+00 : f32
    %204 = vector.broadcast %cst_56 : f32 to vector<1x32xf32>
    %205 = arith.addf %204, %203 : vector<1x32xf32>
    %206 = arith.divf %204, %205 : vector<1x32xf32>
    %207 = vector.extract_strided_slice %196 {offsets = [0, 128], sizes = [1, 32], strides = [1, 1]} : vector<1x384xf32> to vector<1x32xf32>
    %208 = vector.extract_strided_slice %198 {offsets = [0, 128], sizes = [1, 32], strides = [1, 1]} : vector<1x384xf32> to vector<1x32xf32>
    %209 = arith.addf %207, %208 : vector<1x32xf32>
    %210 = arith.negf %209 : vector<1x32xf32>
    %211 = math.exp %210 : vector<1x32xf32>
    %cst_57 = arith.constant 1.000000e+00 : f32
    %212 = vector.broadcast %cst_57 : f32 to vector<1x32xf32>
    %213 = arith.addf %212, %211 : vector<1x32xf32>
    %214 = arith.divf %212, %213 : vector<1x32xf32>
    %215 = vector.extract_strided_slice %196 {offsets = [0, 256], sizes = [1, 32], strides = [1, 1]} : vector<1x384xf32> to vector<1x32xf32>
    %216 = vector.extract_strided_slice %198 {offsets = [0, 256], sizes = [1, 32], strides = [1, 1]} : vector<1x384xf32> to vector<1x32xf32>
    %217 = arith.mulf %206, %216 : vector<1x32xf32>
    %218 = arith.addf %215, %217 : vector<1x32xf32>
    %219 = math.tanh %218 : vector<1x32xf32>
    %cst_58 = arith.constant 1.000000e+00 : f32
    %220 = vector.broadcast %cst_58 : f32 to vector<1x32xf32>
    %221 = arith.subf %220, %214 : vector<1x32xf32>
    %222 = arith.mulf %221, %219 : vector<1x32xf32>
    %223 = arith.mulf %214, %192 : vector<1x32xf32>
    %224 = arith.addf %222, %223 : vector<1x32xf32>
    %c8_i32_59 = arith.constant 8 : i32
    %225 = arith.muli %arg0, %c8_i32_59 : i32
    %226 = arith.addi %225, %c5_i32 : i32
    %c1_i32_60 = arith.constant 1 : i32
    %227 = arith.cmpi slt, %226, %c1_i32_60 : i32
    %228 = arith.select %227, %224, %192 : vector<1x32xf32>
    %229 = arith.index_cast %c5_i32 : i32 to index
    %c0_61 = arith.constant 0 : index
    %230 = vector.load %arg8[%229, %c0_61] : memref<8x32xf32, #tpu.memory_space<vmem>>, vector<1x32xf32>
    tpu.vector_store %arg8[%229, %c0_61], %228 {strides = array<i32>} : memref<8x32xf32, #tpu.memory_space<vmem>>, vector<1x32xf32>,
    %c6_i32 = arith.constant 6 : i32
    %231 = arith.index_cast %c6_i32 : i32 to index
    %c0_62 = arith.constant 0 : index
    %232 = vector.load %arg7[%231, %c0_62] : memref<8x384xf32, #tpu.memory_space<vmem>>, vector<1x384xf32>
    %cst_63 = arith.constant dense<0.000000e+00> : vector<1x384xf32>
    %233 = tpu.matmul %228, %12, %cst_63 {dimension_numbers = #tpu.dot_dimension_numbers<[1], [0], [0], [1], [0, 0, 1, 1], [], []>} : vector<1x32xf32>, vector<32x384xf32>, vector<1x384xf32> -> vector<1x384xf32>
    %234 = arith.addf %233, %13 : vector<1x384xf32>
    %235 = vector.extract_strided_slice %232 {offsets = [0, 0], sizes = [1, 32], strides = [1, 1]} : vector<1x384xf32> to vector<1x32xf32>
    %236 = vector.extract_strided_slice %234 {offsets = [0, 0], sizes = [1, 32], strides = [1, 1]} : vector<1x384xf32> to vector<1x32xf32>
    %237 = arith.addf %235, %236 : vector<1x32xf32>
    %238 = arith.negf %237 : vector<1x32xf32>
    %239 = math.exp %238 : vector<1x32xf32>
    %cst_64 = arith.constant 1.000000e+00 : f32
    %240 = vector.broadcast %cst_64 : f32 to vector<1x32xf32>
    %241 = arith.addf %240, %239 : vector<1x32xf32>
    %242 = arith.divf %240, %241 : vector<1x32xf32>
    %243 = vector.extract_strided_slice %232 {offsets = [0, 128], sizes = [1, 32], strides = [1, 1]} : vector<1x384xf32> to vector<1x32xf32>
    %244 = vector.extract_strided_slice %234 {offsets = [0, 128], sizes = [1, 32], strides = [1, 1]} : vector<1x384xf32> to vector<1x32xf32>
    %245 = arith.addf %243, %244 : vector<1x32xf32>
    %246 = arith.negf %245 : vector<1x32xf32>
    %247 = math.exp %246 : vector<1x32xf32>
    %cst_65 = arith.constant 1.000000e+00 : f32
    %248 = vector.broadcast %cst_65 : f32 to vector<1x32xf32>
    %249 = arith.addf %248, %247 : vector<1x32xf32>
    %250 = arith.divf %248, %249 : vector<1x32xf32>
    %251 = vector.extract_strided_slice %232 {offsets = [0, 256], sizes = [1, 32], strides = [1, 1]} : vector<1x384xf32> to vector<1x32xf32>
    %252 = vector.extract_strided_slice %234 {offsets = [0, 256], sizes = [1, 32], strides = [1, 1]} : vector<1x384xf32> to vector<1x32xf32>
    %253 = arith.mulf %242, %252 : vector<1x32xf32>
    %254 = arith.addf %251, %253 : vector<1x32xf32>
    %255 = math.tanh %254 : vector<1x32xf32>
    %cst_66 = arith.constant 1.000000e+00 : f32
    %256 = vector.broadcast %cst_66 : f32 to vector<1x32xf32>
    %257 = arith.subf %256, %250 : vector<1x32xf32>
    %258 = arith.mulf %257, %255 : vector<1x32xf32>
    %259 = arith.mulf %250, %228 : vector<1x32xf32>
    %260 = arith.addf %258, %259 : vector<1x32xf32>
    %c8_i32_67 = arith.constant 8 : i32
    %261 = arith.muli %arg0, %c8_i32_67 : i32
    %262 = arith.addi %261, %c6_i32 : i32
    %c1_i32_68 = arith.constant 1 : i32
    %263 = arith.cmpi slt, %262, %c1_i32_68 : i32
    %264 = arith.select %263, %260, %228 : vector<1x32xf32>
    %265 = arith.index_cast %c6_i32 : i32 to index
    %c0_69 = arith.constant 0 : index
    %266 = vector.load %arg8[%265, %c0_69] : memref<8x32xf32, #tpu.memory_space<vmem>>, vector<1x32xf32>
    tpu.vector_store %arg8[%265, %c0_69], %264 {strides = array<i32>} : memref<8x32xf32, #tpu.memory_space<vmem>>, vector<1x32xf32>,
    %c7_i32 = arith.constant 7 : i32
    %267 = arith.index_cast %c7_i32 : i32 to index
    %c0_70 = arith.constant 0 : index
    %268 = vector.load %arg7[%267, %c0_70] : memref<8x384xf32, #tpu.memory_space<vmem>>, vector<1x384xf32>
    %cst_71 = arith.constant dense<0.000000e+00> : vector<1x384xf32>
    %269 = tpu.matmul %264, %12, %cst_71 {dimension_numbers = #tpu.dot_dimension_numbers<[1], [0], [0], [1], [0, 0, 1, 1], [], []>} : vector<1x32xf32>, vector<32x384xf32>, vector<1x384xf32> -> vector<1x384xf32>
    %270 = arith.addf %269, %13 : vector<1x384xf32>
    %271 = vector.extract_strided_slice %268 {offsets = [0, 0], sizes = [1, 32], strides = [1, 1]} : vector<1x384xf32> to vector<1x32xf32>
    %272 = vector.extract_strided_slice %270 {offsets = [0, 0], sizes = [1, 32], strides = [1, 1]} : vector<1x384xf32> to vector<1x32xf32>
    %273 = arith.addf %271, %272 : vector<1x32xf32>
    %274 = arith.negf %273 : vector<1x32xf32>
    %275 = math.exp %274 : vector<1x32xf32>
    %cst_72 = arith.constant 1.000000e+00 : f32
    %276 = vector.broadcast %cst_72 : f32 to vector<1x32xf32>
    %277 = arith.addf %276, %275 : vector<1x32xf32>
    %278 = arith.divf %276, %277 : vector<1x32xf32>
    %279 = vector.extract_strided_slice %268 {offsets = [0, 128], sizes = [1, 32], strides = [1, 1]} : vector<1x384xf32> to vector<1x32xf32>
    %280 = vector.extract_strided_slice %270 {offsets = [0, 128], sizes = [1, 32], strides = [1, 1]} : vector<1x384xf32> to vector<1x32xf32>
    %281 = arith.addf %279, %280 : vector<1x32xf32>
    %282 = arith.negf %281 : vector<1x32xf32>
    %283 = math.exp %282 : vector<1x32xf32>
    %cst_73 = arith.constant 1.000000e+00 : f32
    %284 = vector.broadcast %cst_73 : f32 to vector<1x32xf32>
    %285 = arith.addf %284, %283 : vector<1x32xf32>
    %286 = arith.divf %284, %285 : vector<1x32xf32>
    %287 = vector.extract_strided_slice %268 {offsets = [0, 256], sizes = [1, 32], strides = [1, 1]} : vector<1x384xf32> to vector<1x32xf32>
    %288 = vector.extract_strided_slice %270 {offsets = [0, 256], sizes = [1, 32], strides = [1, 1]} : vector<1x384xf32> to vector<1x32xf32>
    %289 = arith.mulf %278, %288 : vector<1x32xf32>
    %290 = arith.addf %287, %289 : vector<1x32xf32>
    %291 = math.tanh %290 : vector<1x32xf32>
    %cst_74 = arith.constant 1.000000e+00 : f32
    %292 = vector.broadcast %cst_74 : f32 to vector<1x32xf32>
    %293 = arith.subf %292, %286 : vector<1x32xf32>
    %294 = arith.mulf %293, %291 : vector<1x32xf32>
    %295 = arith.mulf %286, %264 : vector<1x32xf32>
    %296 = arith.addf %294, %295 : vector<1x32xf32>
    %c8_i32_75 = arith.constant 8 : i32
    %297 = arith.muli %arg0, %c8_i32_75 : i32
    %298 = arith.addi %297, %c7_i32 : i32
    %c1_i32_76 = arith.constant 1 : i32
    %299 = arith.cmpi slt, %298, %c1_i32_76 : i32
    %300 = arith.select %299, %296, %264 : vector<1x32xf32>
    %301 = arith.index_cast %c7_i32 : i32 to index
    %c0_77 = arith.constant 0 : index
    %302 = vector.load %arg8[%301, %c0_77] : memref<8x32xf32, #tpu.memory_space<vmem>>, vector<1x32xf32>
    tpu.vector_store %arg8[%301, %c0_77], %300 {strides = array<i32>} : memref<8x32xf32, #tpu.memory_space<vmem>>, vector<1x32xf32>,
    %c8_i32_78 = arith.constant 8 : i32
    %c0_79 = arith.constant 0 : index
    %c0_80 = arith.constant 0 : index
    %303 = vector.load %arg6[%c0_79, %c0_80] : memref<1x32xf32, #tpu.memory_space<vmem>>, vector<1x32xf32>
    tpu.vector_store %arg6[%c0_79, %c0_80], %300 {strides = array<i32>} : memref<1x32xf32, #tpu.memory_space<vmem>>, vector<1x32xf32>,
    %c0_81 = arith.constant 0 : index
    %c0_82 = arith.constant 0 : index
    %304 = vector.load %arg8[%c0_81, %c0_82] : memref<8x32xf32, #tpu.memory_space<vmem>>, vector<8x32xf32>
    %c0_83 = arith.constant 0 : index
    %c768 = arith.constant 768 : index
    %305 = vector.load %arg3[%c0_83, %c768] : memref<32x896xf32, #tpu.memory_space<vmem>>, vector<32x128xf32>
    %cst_84 = arith.constant dense<0.000000e+00> : vector<8x128xf32>
    %306 = tpu.matmul %304, %305, %cst_84 {dimension_numbers = #tpu.dot_dimension_numbers<[1], [0], [0], [1], [0, 0, 1, 1], [], []>} : vector<8x32xf32>, vector<32x128xf32>, vector<8x128xf32> -> vector<8x128xf32>
    %c0_85 = arith.constant 0 : index
    %c768_86 = arith.constant 768 : index
    %307 = vector.load %arg4[%c0_85, %c768_86] : memref<1x896xf32, #tpu.memory_space<vmem>>, vector<1x128xf32>
    %308 = vector.broadcast %307 : vector<1x128xf32> to vector<8x128xf32>
    %309 = arith.addf %306, %308 : vector<8x128xf32>
    %cst_87 = arith.constant dense<0xFF800000> : vector<8xf32>
    %310 = vector.multi_reduction <maximumf>, %309, %cst_87 [1] : vector<8x128xf32> to vector<8xf32>
    %311 = vector.shape_cast %310 : vector<8xf32> to vector<8x1xf32>
    %312 = vector.broadcast %311 : vector<8x1xf32> to vector<8x128xf32>
    %313 = arith.subf %309, %312 : vector<8x128xf32>
    %314 = math.exp %313 : vector<8x128xf32>
    %cst_88 = arith.constant dense<0.000000e+00> : vector<8xf32>
    %315 = vector.multi_reduction <add>, %314, %cst_88 [1] : vector<8x128xf32> to vector<8xf32>
    %316 = vector.shape_cast %315 : vector<8xf32> to vector<8x1xf32>
    %317 = vector.broadcast %311 : vector<8x1xf32> to vector<8x128xf32>
    %318 = arith.subf %309, %317 : vector<8x128xf32>
    %319 = math.log %316 : vector<8x1xf32>
    %320 = vector.broadcast %319 : vector<8x1xf32> to vector<8x128xf32>
    %321 = arith.subf %318, %320 : vector<8x128xf32>
    %c0_89 = arith.constant 0 : index
    %c0_90 = arith.constant 0 : index
    %322 = vector.load %arg5[%c0_89, %c0_90] : memref<8x128xf32, #tpu.memory_space<vmem>>, vector<8x128xf32>
    tpu.vector_store %arg5[%c0_89, %c0_90], %321 {strides = array<i32>} : memref<8x128xf32, #tpu.memory_space<vmem>>, vector<8x128xf32>,
    return
  }
  func.func @transform_0(%arg0: i32) -> (i32, i32) {
    %c0_i32 = arith.constant 0 : i32
    %c0_i32_0 = arith.constant 0 : i32
    return %arg0, %c0_i32 : i32, i32
  }
  func.func @transform_1(%arg0: i32) -> (i32, i32) {
    %c0_i32 = arith.constant 0 : i32
    %c0_i32_0 = arith.constant 0 : i32
    %c0_i32_1 = arith.constant 0 : i32
    return %c0_i32, %c0_i32_0 : i32, i32
  }
  func.func @transform_2(%arg0: i32) -> (i32, i32) {
    %c0_i32 = arith.constant 0 : i32
    %c0_i32_0 = arith.constant 0 : i32
    %c0_i32_1 = arith.constant 0 : i32
    return %c0_i32, %c0_i32_0 : i32, i32
  }
  func.func @transform_3(%arg0: i32) -> (i32, i32) {
    %c0_i32 = arith.constant 0 : i32
    %c0_i32_0 = arith.constant 0 : i32
    %c0_i32_1 = arith.constant 0 : i32
    return %c0_i32, %c0_i32_0 : i32, i32
  }
  func.func @transform_4(%arg0: i32) -> (i32, i32) {
    %c0_i32 = arith.constant 0 : i32
    %c0_i32_0 = arith.constant 0 : i32
    return %arg0, %c0_i32 : i32, i32
  }
  func.func @transform_5(%arg0: i32) -> (i32, i32) {
    %c0_i32 = arith.constant 0 : i32
    %c0_i32_0 = arith.constant 0 : i32
    %c0_i32_1 = arith.constant 0 : i32
    return %c0_i32, %c0_i32_0 : i32, i32
  }
}

</mosaic_0001>

<bundles_post_ra>
// kernel: tpu_custom_call.1
= control target key start
LH: loop header
LB: loop body
LE: loop exit
PB: predicated region body
PF: predicated region fallthrough
CT: control target
= control target key end

     0   :  { %11 = vsyncpa [#allocation5], 0  ;;  %s2543_s0 = inlined_call_operand.hbm [shape: f32[8,32], index: 0, kind: input, shape index: {}]   ;;  %s2544_s1 = inlined_call_operand.vmem [shape: f32[1,32], index: 1, kind: input, shape index: {}]   ;;  %s2545_s2 = inlined_call_operand.hbm [shape: f32[32,896], index: 2, kind: input, shape index: {}]   ;;  %s2546_s3 = inlined_call_operand.vmem [shape: f32[1,896], index: 3, kind: input, shape index: {}]   ;;  %s2547_s4 = inlined_call_operand.hbm [shape: f32[8,128], index: 4, kind: output, shape index: {0}]   ;;  %s2548_s5 = inlined_call_operand.hbm [shape: f32[1,32], index: 5, kind: output, shape index: {1}]  }
   0x1   :  { %12 = vsyncpa [#allocation8], 0 }
   0x2   :  { %13 = vsyncpa [#allocation6], 0 }
   0x3   :  { %14 = vsyncpa [#allocation11], 0  ;;  %s2269_s18 = smov [#allocation4]   ;;  %s2270_s20 = smov [#allocation7]  }
   0x4   :  { %s21_s19 = sshll.u32 %s2269_s18, 4  ;;  %s32_s21 = sshll.u32 %s2270_s20, 4  ;;  %s22_s19 = int_to_ptr.vmem [resolvable:$true] %s21_s19  ;;  %s2308_s21 = int_to_ptr.vmem [resolvable:$true] %s32_s21 }
   0x5   :  { %s2173_s24 = scalar_lea.hbm %s2543_s0, 128 }
   0x6   :  { %p2174_p0 = scmp.ne.s32.totalorder %s2543_s0, %s2173_s24  ;;  %p2177_p1 = scmp.lt.u32.totalorder %s2173_s24, %s2543_s0 }
   0x8   :  { %p2179_p2 = pnand %p2177_p1, %p2174_p0 }
   0xa   :  { %2182 = shalt.err (!%p2179_p2)
}
   0xb   :  { %s2183_s29 = scalar_lea.vmem %s22_s19, 128  ;;  %p2188_p4 = scmp.lt.s32.totalorder %s22_s19, %s22_s19 }
   0xc   :  { %p2184_p3 = scmp.ne.s32.totalorder %s22_s19, %s2183_s29  ;;  %p2189_p5 = scmp.lt.s32.totalorder %s2183_s29, %s2183_s29 }
   0xe   :  { %p2190_p6 = por %p2189_p5, %p2188_p4 }
  0x10   :  { %p2191_p7 = pnand %p2190_p6, %p2184_p3 }
  0x12   :  { %2194 = shalt.err (!%p2191_p7)
}
  0x13   :  { %24 = dma.hbm_to_vmem [thread:$0]  %s2543_s0, 128, %s22_s19, [#allocation5]  }
  0x14   :  { %s2195_s9 = scalar_lea.hbm %s2545_s2, 3584 }
  0x15   :  { %p2196_p8 = scmp.ne.s32.totalorder %s2545_s2, %s2195_s9  ;;  %p2199_p9 = scmp.lt.u32.totalorder %s2195_s9, %s2545_s2 }
  0x17   :  { %p2201_p10 = pnand %p2199_p9, %p2196_p8 }
  0x19   :  { %2204 = shalt.err (!%p2201_p10)
}
  0x1a   :  { %s2205_s14 = scalar_lea.vmem %s2308_s21, 3584  ;;  %p2210_p12 = scmp.lt.s32.totalorder %s2308_s21, %s2308_s21 }
  0x1b   :  { %p2206_p11 = scmp.ne.s32.totalorder %s2308_s21, %s2205_s14  ;;  %p2211_p13 = scmp.lt.s32.totalorder %s2205_s14, %s2205_s14 }
  0x1d   :  { %p2212_p0 = por %p2211_p13, %p2210_p12 }
  0x1f   :  { %p2213_p1 = pnand %p2212_p0, %p2206_p11 }
  0x21   :  { %2216 = shalt.err (!%p2213_p1)
}
  0x22   :  { %s2271_s0 = smov 896   ;;  %s2272_s15 = smov 56  }
  0x23   :  { %38 = dma.hbm_to_vmem [thread:$0]  %s2545_s2, 3584, %s2308_s21, [#allocation8], %s2271_s0, %s2271_s0, %s2272_s15  }
  0x24   :  { %2261 = dma.done.wait [#allocation5], 128  }
  0x25   :  { %2262 = vsyncadd [#allocation5], 4294967168 }
  0x26   :  { %2263 = dma.done.wait [#allocation8], 3584  }
  0x27   :  { %2264 = vsyncadd [#allocation8], 4294963712  ;;  %v2273_v0 = vmov 0.0|0.0   ;;  %v2274_v1 = vmov 0.0   ;;  %vm2275_vm0 = vmmov 0   ;;  %v57_v2 = vld [vmem:[#allocation7 + $0x8] sm:$0xff]  ;;  %v70_v42 = vlaneseq }
  0x28   :  { %2026 = vmatprep.subr.bf16.mxu1 %v2273_v0  ;;  %153 = vmatprep.mubr.f32.mxu0 %v2274_v1  ;;  %v60_v3 = vld [vmem:[#allocation7 + $0x40] sm:$0xff]  ;;  %v59_v6 = vld [vmem:[#allocation7 + $0x38] sm:$0xff]  ;;  %v58_v7 = vld [vmem:[#allocation7 + $0x10] sm:$0xff]  ;;  %vm52_vm1 = vcmask 253952   ;;  %vm85_vm2 = vcmask 261120   ;;  %s2276_s24 = smov [#allocation10]  }
  0x29   :  { %1916 = vmatprep.mubr.msk.f32.mxu1 %vm2275_vm0, %v2274_v1  ;;  %v56_v4 = vld [vmem:[#allocation7] sm:$0xff]  ;;  %v2018_v5 = vpack.c.bf16 %v60_v3, %v57_v2  ;;  %v61_v8 = vld [vmem:[#allocation7 + $0x48] sm:$0xff]  ;;  %v63_v11 = vld [vmem:[#allocation7 + $0x78] sm:$0xff]  ;;  %v71_v43 = vshrl.u32 %v70_v42, 7  ;;  %s1808_s25 = sshll.u32 %s2276_s24, 4  ;;  %s1809_s25 = int_to_ptr.vmem [resolvable:$true] %s1808_s25 }
  0x2a   :  { %v2020_v9 = vpack.c.bf16 %v59_v6, %v56_v4  ;;  %v2027_v10 = vpack.c.bf16 %v61_v8, %v58_v7  ;;  %v66_v12 = vld [vmem:[#allocation7 + $0xb0] sm:$0xff]  ;;  %v65_v15 = vld [vmem:[#allocation7 + $0xa8] sm:$0xff]  ;;  %v64_v16 = vld [vmem:[#allocation7 + $0x80] sm:$0xff]  ;;  %s2217_s26 = scalar_lea.vmem %s1809_s25, 16  ;;  %s2221_s27 = scalar_lea.vmem %s1809_s25, 32 }
  0x2b   :  { %v62_v13 = vld [vmem:[#allocation7 + $0x70] sm:$0xff]  ;;  %2019 = vmatprep.subr.bf16.mxu0 %v2018_v5  ;;  %v2022_v14 = vpack.c.bf16 %v66_v12, %v63_v11  ;;  %v67_v17 = vld [vmem:[#allocation7 + $0xb8] sm:$0xff]  ;;  %v234_v21 = vld [vmem:[#allocation7 + $0x20] sm:$0xff]  ;;  %v72_v44 = vsub.s32 0, %v71_v43  ;;  %v80_v45 = vsub.s32 2, %v71_v43  ;;  %v76_v47 = vsub.s32 1, %v71_v43  ;;  %p2218_p2 = scmp.ne.s32.totalorder %s1809_s25, %s2217_s26  ;;  %p2222_p3 = scmp.lt.s32.totalorder %s1809_s25, %s1809_s25 }
  0x2c   :  { %2021 = vmatpush1.bf16.msra.mxu0 %v2020_v9  ;;  %2028 = vmatpush3.bf16.msra.mxu1 %v2027_v10  ;;  %v2024_v18 = vpack.c.bf16 %v65_v15, %v62_v13  ;;  %v2030_v19 = vpack.c.bf16 %v67_v17, %v64_v16  ;;  %v54_v20 = vld [vmem:[#allocation4] sm:$0xff]  ;;  %v236_v25 = vld [vmem:[#allocation7 + $0x50] sm:$0xff]  ;;  %v243_v27 = vld [vmem:[#allocation7 + $0xc8] sm:$0xff]  ;;  %p2223_p4 = scmp.lt.s32.totalorder %s2221_s27, %s2217_s26 }
  0x2d   :  { %v237_v22 = vld [vmem:[#allocation7 + $0x58] sm:$0xff]  ;;  %2023 = vmatprep.subr.bf16.mxu0 %v2022_v14  ;;  %2029 = vmatprep.subr.bf16.mxu1 %v2273_v0  ;;  %v240_v26 = vld [vmem:[#allocation7 + $0x90] sm:$0xff]  ;;  %v55_v28 = vmax.f32 %v54_v20, 0.0  ;;  %v235_v30 = vld [vmem:[#allocation7 + $0x28] sm:$0xff] }
  0x2e   :  { %v2344_v23 = vpack.c.bf16 %v237_v22, %v234_v21  ;;  %v233_v24 = vld [vmem:[#allocation7 + $0x18] sm:$0xff]  ;;  %v238_v31 = vld [vmem:[#allocation7 + $0x60] sm:$0xff]  ;;  %v2353_v33 = vpack.c.bf16 %v243_v27, %v240_v26  ;;  %v239_v34 = vld [vmem:[#allocation7 + $0x88] sm:$0xff]  ;;  %p2224_p5 = por %p2223_p4, %p2222_p3 }
  0x2f   :  { %v51_v29 = vld [vmem:[%s2544_s1] sm:$0x1]  ;;  %v2349_v32 = vpack.c.bf16 %v236_v25, %v233_v24  ;;  %v242_v35 = vld [vmem:[#allocation7 + $0xc0] sm:$0xff]  ;;  %v2356_v36 = vpack.c.bf16 %v238_v31, %v235_v30  ;;  %v244_v38 = vld [vmem:[#allocation7 + $0xd0] sm:$0xff] }
  0x30   :  { %2025 = vmatpush1.bf16.msra.mxu0 %v2024_v18  ;;  %2031 = vmatpush3.bf16.msra.mxu1 %v2030_v19  ;;  %53 = vst.msk [vmem:[#allocation10] sm:$0x1] %vm52_vm1, %v51_v29  ;;  %v241_v37 = vld [vmem:[#allocation7 + $0x98] sm:$0xff]  ;;  %v2361_v39 = vpack.c.bf16 %v242_v35, %v239_v34  ;;  %v1698_v29 = vld [vmem:[#allocation7 + $0x68] sm:$0xff]  ;;  %v1699_v30 = vld [vmem:[#allocation7 + $0xa0] sm:$0xff]  ;;  %p2225_p6 = pnand %p2224_p5, %p2218_p2 }
  0x31   :  { %2033 = vmatprep.subr.bf16.mxu0 %v2344_v23  ;;  %2040 = vmatprep.subr.bf16.mxu1 %v2273_v0  ;;  %v2366_v40 = vpack.c.bf16 %v244_v38, %v241_v37  ;;  %v68_v46 = vld [vmem:[%s2546_s3] sm:$0x7]  ;;  %v245_v58 = vld [vmem:[%s2546_s3 + $0x3] sm:$0x7] }
  0x32   :  { %v73_v48 = vrot.slane %v68_v46, %v72_v44  ;;  %v81_v49 = vrot.slane %v68_v46, %v80_v45  ;;  %v77_v50 = vrot.slane %v68_v46, %v76_v47  ;;  %v252_v59 = vrot.slane %v245_v58, %v72_v44  ;;  %v1700_v31 = vld [vmem:[#allocation7 + $0xd8] sm:$0xff] }
  0x33   :  { %1822 = vmatmul.mubr.msk.f32.vlgmr.msra.gmra.mrb[0].mxu0 %vm85_vm2, %v55_v28  ;;  %1917 = vmatmul.mubr.msk.f32.vlgmr.msra.gmra.mrb[0].mxu1 %vm85_vm2, %v55_v28  ;;  %v256_v62 = vrot.slane %v245_v58, %v76_v47  ;;  %v260_v13 = vrot.slane %v245_v58, %v80_v45  ;;  %v1697_v28 = vld [vmem:[#allocation7 + $0x30] sm:$0xff] }
  0x34   :  { %2035 = vmatpush1.bf16.msra.mxu0 %v2349_v32  ;;  %331 = vmatprep.mubr.f32.mxu0 %v2274_v1 }
  0x35   :  { %2037 = vmatprep.subr.bf16.mxu0 %v2353_v33  ;;  %2042 = vmatpush3.bf16.msra.mxu1 %v2356_v36 }
  0x36   :  { %2043 = vmatprep.subr.bf16.mxu1 %v2273_v0  ;;  %1927 = vmatprep.mubr.msk.f32.mxu1 %vm2275_vm0, %v2274_v1 }
  0x37   :  { %v2372_v41 = vld [vmem:[#allocation10] sm:$0x1] }
  0x38   :  { %2039 = vmatpush1.bf16.msra.mxu0 %v2361_v39 }
  0x39   :  { %2045 = vmatpush3.bf16.msra.mxu1 %v2366_v40  ;;  %2047 = vmatprep.subr.bf16.mxu0 %v2344_v23 }
  0x3a   :  { %2054 = vmatprep.subr.bf16.mxu1 %v2273_v0 }
  0x3b   :  { %1824 = vmatmul.mubr.msk.f32.vlgmr.msra.gmra.mrb[2].mxu0 %vm85_vm2, %v2372_v41 }
  0x3c   :  { %1928 = vmatmul.mubr.msk.f32.vlgmr.msra.gmra.mrb[2].mxu1 %vm85_vm2, %v2372_v41  ;;  %2049 = vmatpush1.bf16.msra.mxu0 %v2349_v32 }
  0x3d   :  { %2056 = vmatpush3.bf16.msra.mxu1 %v2356_v36  ;;  %2051 = vmatprep.subr.bf16.mxu0 %v2353_v33 }
  0x3e   :  { %2057 = vmatprep.subr.bf16.mxu1 %v2273_v0  ;;  %511 = vmatprep.mubr.f32.mxu0 %v2274_v1 }
  0x3f   :  { %1938 = vmatprep.mubr.msk.f32.mxu1 %vm2275_vm0, %v2274_v1 }
  0x40   :  { %2053 = vmatpush1.bf16.msra.mxu0 %v2361_v39 }
  0x41   :  { %2059 = vmatpush3.bf16.msra.mxu1 %v2366_v40  ;;  %2061 = vmatprep.subr.bf16.mxu0 %v2344_v23 }
  0x42   :  { %2068 = vmatprep.subr.bf16.mxu1 %v2273_v0 }
 0x106   :  { %v155_v51 = vpop.f32.mrb[0].mxu0  ;;  %v226_v52 = vpop.f32.mrb[0].mxu1 }
 0x107   :  { %v156_v53 = vadd.f32 %v155_v51, %v73_v48  ;;  %v227_v54 = vadd.f32 %v226_v52, %v81_v49  ;;  %v157_v55 = vpop.f32.mrb[1].mxu0  ;;  %v1918_v56 = vpop.f32.mrb[1].mxu1 }
 0x108   :  { %v158_v57 = vadd.f32 %v157_v55, %v77_v50 }
 0x109   :  { %230 = vst [vmem:[#allocation2] sm:$0xff] %v156_v53  ;;  %232 = vst [vmem:[#allocation2 + $0x10] sm:$0xff] %v227_v54 }
 0x10a   :  { %231 = vst [vmem:[#allocation2 + $0x8] sm:$0xff] %v158_v57 }
 0x10e   :  { %v333_v60 = vpop.f32.mrb[2].mxu0 }
 0x10f   :  { %v334_v61 = vadd.f32 %v333_v60, %v252_v59  ;;  %v335_v63 = vpop.f32.mrb[3].mxu0  ;;  %v404_v2 = vpop.f32.mrb[2].mxu1  ;;  %v1856_v60 = vld [vmem:[%s2546_s3 + $0x6] ss:$0 sm:$0xff] }
 0x110   :  { %v1929_v3 = vpop.f32.mrb[3].mxu1  ;;  %v336_v7 = vadd.f32 %v335_v63, %v256_v62  ;;  %v405_v16 = vadd.f32 %v404_v2, %v260_v13 }
 0x111   :  { %v247_v4 = vld [vmem:[#allocation2] ss:$8 sm:$0x7] }
 0x112   :  { %v408_v5 = vadd.f32 %v334_v61, %v247_v4  ;;  %v416_v6 = vrot.slane %v247_v4, 1  ;;  %v426_v19 = vrot.slane %v247_v4, 2 }
 0x114   :  { %v1826_v8 = vmul.f32 -1.442695, %v408_v5  ;;  %v418_v9 = vadd.f32 %v416_v6, %v336_v7 }
 0x116   :  { %2159 = vpow2.f32 %v1826_v8  ;;  %v1827_v10 = vmul.f32 -1.442695, %v418_v9 }
 0x118   :  { %2161 = vpow2.f32 %v1827_v10 }
 0x120   :  { %v2160_v11 = vpop.eup %2159 }
 0x121   :  { %v412_v12 = vadd.f32 1.0, %v2160_v11 }
 0x122   :  { %v2162_v14 = vpop.eup %2161 }
 0x123   :  { %2163 = vrcp.f32 %v412_v12  ;;  %v422_v15 = vadd.f32 1.0, %v2162_v14 }
 0x125   :  { %2165 = vrcp.f32 %v422_v15 }
 0x12d   :  { %v2164_v17 = vpop.eup %2163 }
 0x12e   :  { %v425_v18 = vmul.f32 %v2164_v17, %v405_v16 }
 0x12f   :  { %v2166_v21 = vpop.eup %2165 }
 0x130   :  { %v428_v20 = vadd.f32 %v426_v19, %v425_v18  ;;  %v430_v22 = vsub.f32 1.0, %v2166_v21  ;;  %v432_v25 = vmul.f32 %v2166_v21, %v2372_v41 }
 0x132   :  { %2167 = vtanh.f32 %v428_v20 }
 0x13c   :  { %v2168_v24 = vpop.eup %2167 }
 0x13d   :  { %v431_v26 = vmul.f32 %v2168_v24, %v430_v22 }
 0x13f   :  { %v2399_v27 = vadd.f32 %v432_v25, %v431_v26 }
 0x141   :  { %441 = vst.msk [vmem:[#allocation3] sm:$0x1] %vm52_vm1, %v2399_v27  ;;  %620 = vst.msk [vmem:[#allocation3 + $0x1] sm:$0x1] %vm52_vm1, %v2399_v27  ;;  %1828 = vmatmul.mubr.msk.f32.vlgmr.msra.gmra.mrb[4].mxu0 %vm85_vm2, %v2399_v27  ;;  %1939 = vmatmul.mubr.msk.f32.vlgmr.msra.gmra.mrb[4].mxu1 %vm85_vm2, %v2399_v27 }
 0x142   :  { %799 = vst.msk [vmem:[#allocation3 + $0x2] sm:$0x1] %vm52_vm1, %v2399_v27  ;;  %978 = vst.msk [vmem:[#allocation3 + $0x3] sm:$0x1] %vm52_vm1, %v2399_v27  ;;  %2063 = vmatpush1.bf16.msra.mxu0 %v2349_v32  ;;  %2070 = vmatpush3.bf16.msra.mxu1 %v2356_v36 }
 0x143   :  { %1157 = vst.msk [vmem:[#allocation3 + $0x4] sm:$0x1] %vm52_vm1, %v2399_v27  ;;  %1336 = vst.msk [vmem:[#allocation3 + $0x5] sm:$0x1] %vm52_vm1, %v2399_v27  ;;  %2065 = vmatprep.subr.bf16.mxu0 %v2353_v33  ;;  %2071 = vmatprep.subr.bf16.mxu1 %v2273_v0 }
 0x144   :  { %1515 = vst.msk [vmem:[#allocation3 + $0x6] sm:$0x1] %vm52_vm1, %v2399_v27  ;;  %1694 = vst.msk [vmem:[#allocation3 + $0x7] sm:$0x1] %vm52_vm1, %v2399_v27  ;;  %690 = vmatprep.mubr.f32.mxu0 %v2274_v1  ;;  %1949 = vmatprep.mubr.msk.f32.mxu1 %vm2275_vm0, %v2274_v1 }
 0x145   :  { %1695 = vst.msk [vmem:[#allocation10] sm:$0x1] %vm52_vm1, %v2399_v27 }
 0x146   :  { %2067 = vmatpush1.bf16.msra.mxu0 %v2361_v39  ;;  %2073 = vmatpush3.bf16.msra.mxu1 %v2366_v40 }
 0x147   :  { %2075 = vmatprep.subr.bf16.mxu0 %v2344_v23  ;;  %2082 = vmatprep.subr.bf16.mxu1 %v2273_v0 }
 0x149   :  { %1832 = vmatmul.mubr.msk.f32.vlgmr.msra.gmra.mrb[6].mxu0 %vm85_vm2, %v2399_v27  ;;  %1950 = vmatmul.mubr.msk.f32.vlgmr.msra.gmra.mrb[6].mxu1 %vm85_vm2, %v2399_v27 }
 0x14a   :  { %2077 = vmatpush1.bf16.msra.mxu0 %v2349_v32  ;;  %2084 = vmatpush3.bf16.msra.mxu1 %v2356_v36 }
 0x14b   :  { %2079 = vmatprep.subr.bf16.mxu0 %v2353_v33  ;;  %2085 = vmatprep.subr.bf16.mxu1 %v2273_v0 }
 0x14c   :  { %869 = vmatprep.mubr.f32.mxu0 %v2274_v1  ;;  %1960 = vmatprep.mubr.msk.f32.mxu1 %vm2275_vm0, %v2274_v1 }
 0x14e   :  { %2081 = vmatpush1.bf16.msra.mxu0 %v2361_v39  ;;  %2087 = vmatpush3.bf16.msra.mxu1 %v2366_v40 }
 0x14f   :  { %2089 = vmatprep.subr.bf16.mxu0 %v2344_v23  ;;  %2096 = vmatprep.subr.bf16.mxu1 %v2273_v0 }
 0x151   :  { %1836 = vmatmul.mubr.msk.f32.vlgmr.msra.gmra.mrb[8].mxu0 %vm85_vm2, %v2399_v27  ;;  %1961 = vmatmul.mubr.msk.f32.vlgmr.msra.gmra.mrb[8].mxu1 %vm85_vm2, %v2399_v27 }
 0x152   :  { %2091 = vmatpush1.bf16.msra.mxu0 %v2349_v32  ;;  %2098 = vmatpush3.bf16.msra.mxu1 %v2356_v36 }
 0x153   :  { %2093 = vmatprep.subr.bf16.mxu0 %v2353_v33  ;;  %2099 = vmatprep.subr.bf16.mxu1 %v2273_v0 }
 0x154   :  { %1048 = vmatprep.mubr.f32.mxu0 %v2274_v1  ;;  %1971 = vmatprep.mubr.msk.f32.mxu1 %vm2275_vm0, %v2274_v1 }
 0x156   :  { %2095 = vmatpush1.bf16.msra.mxu0 %v2361_v39  ;;  %2101 = vmatpush3.bf16.msra.mxu1 %v2366_v40 }
 0x157   :  { %2103 = vmatprep.subr.bf16.mxu0 %v2344_v23  ;;  %2110 = vmatprep.subr.bf16.mxu1 %v2273_v0 }
 0x159   :  { %1840 = vmatmul.mubr.msk.f32.vlgmr.msra.gmra.mrb[10].mxu0 %vm85_vm2, %v2399_v27  ;;  %1972 = vmatmul.mubr.msk.f32.vlgmr.msra.gmra.mrb[10].mxu1 %vm85_vm2, %v2399_v27 }
 0x15a   :  { %2105 = vmatpush1.bf16.msra.mxu0 %v2349_v32  ;;  %2112 = vmatpush3.bf16.msra.mxu1 %v2356_v36 }
 0x15b   :  { %2107 = vmatprep.subr.bf16.mxu0 %v2353_v33  ;;  %2113 = vmatprep.subr.bf16.mxu1 %v2273_v0 }
 0x15c   :  { %1227 = vmatprep.mubr.f32.mxu0 %v2274_v1  ;;  %1982 = vmatprep.mubr.msk.f32.mxu1 %vm2275_vm0, %v2274_v1 }
 0x15e   :  { %2109 = vmatpush1.bf16.msra.mxu0 %v2361_v39  ;;  %2115 = vmatpush3.bf16.msra.mxu1 %v2366_v40 }
 0x15f   :  { %2117 = vmatprep.subr.bf16.mxu0 %v2344_v23  ;;  %2124 = vmatprep.subr.bf16.mxu1 %v2273_v0 }
 0x161   :  { %1844 = vmatmul.mubr.msk.f32.vlgmr.msra.gmra.mrb[12].mxu0 %vm85_vm2, %v2399_v27  ;;  %1983 = vmatmul.mubr.msk.f32.vlgmr.msra.gmra.mrb[12].mxu1 %vm85_vm2, %v2399_v27 }
 0x162   :  { %2119 = vmatpush1.bf16.msra.mxu0 %v2349_v32  ;;  %2126 = vmatpush3.bf16.msra.mxu1 %v2356_v36 }
 0x163   :  { %2121 = vmatprep.subr.bf16.mxu0 %v2353_v33  ;;  %2127 = vmatprep.subr.bf16.mxu1 %v2273_v0 }
 0x164   :  { %1406 = vmatprep.mubr.f32.mxu0 %v2274_v1  ;;  %1993 = vmatprep.mubr.msk.f32.mxu1 %vm2275_vm0, %v2274_v1 }
 0x166   :  { %2123 = vmatpush1.bf16.msra.mxu0 %v2361_v39  ;;  %2129 = vmatpush3.bf16.msra.mxu1 %v2366_v40 }
 0x167   :  { %2131 = vmatprep.subr.bf16.mxu0 %v2344_v23  ;;  %2138 = vmatprep.subr.bf16.mxu1 %v2273_v0  ;;  %v2145_v23 = vpack.c.bf16 %v1698_v29, %v1697_v28 }
 0x169   :  { %1848 = vmatmul.mubr.msk.f32.vlgmr.msra.gmra.mrb[14].mxu0 %vm85_vm2, %v2399_v27  ;;  %1994 = vmatmul.mubr.msk.f32.vlgmr.msra.gmra.mrb[14].mxu1 %vm85_vm2, %v2399_v27 }
 0x16a   :  { %2133 = vmatpush1.bf16.msra.mxu0 %v2349_v32  ;;  %2140 = vmatpush3.bf16.msra.mxu1 %v2356_v36  ;;  %v2148_v32 = vpack.c.bf16 %v1700_v31, %v1699_v30 }
 0x16b   :  { %2135 = vmatprep.subr.bf16.mxu0 %v2353_v33  ;;  %2141 = vmatprep.subr.bf16.mxu1 %v2273_v0  ;;  %v1696_v33 = vld [vmem:[#allocation3] sm:$0xff] }
 0x16c   :  { %1585 = vmatprep.mubr.f32.mxu0 %v2274_v1  ;;  %2004 = vmatprep.mubr.msk.f32.mxu1 %vm2275_vm0, %v2274_v1 }
 0x16e   :  { %2137 = vmatpush1.bf16.msra.mxu0 %v2361_v39  ;;  %2143 = vmatpush3.bf16.msra.mxu1 %v2366_v40 }
 0x16f   :  { %2144 = vmatprep.subr.bf16.mxu0 %v2273_v0 }
 0x171   :  { %1852 = vmatmul.mubr.msk.f32.vlgmr.msra.gmra.mrb[16].mxu0 %vm85_vm2, %v2399_v27  ;;  %2005 = vmatmul.mubr.msk.f32.vlgmr.msra.gmra.mrb[16].mxu1 %vm85_vm2, %v2399_v27 }
 0x172   :  { %2146 = vmatpush3.bf16.msra.mxu0 %v2145_v23  ;;  %2015 = vmatprep.mubr.msk.f32.mxu0 %vm2275_vm0, %v2274_v1 }
 0x173   :  { %2147 = vmatprep.subr.bf16.mxu0 %v2273_v0 }
 0x176   :  { %2149 = vmatpush3.bf16.msra.mxu0 %v2148_v32 }
 0x179   :  { %2016 = vmatmul.mubr.msk.f32.vlgmr.msra.gmra.mrb[18].mxu0 %vm85_vm2, %v1696_v33 }
 0x214   :  { %v513_v34 = vpop.f32.mrb[4].mxu0  ;;  %v584_v35 = vpop.f32.mrb[4].mxu1 }
 0x215   :  { %v515_v36 = vpop.f32.mrb[5].mxu0  ;;  %v1940_v37 = vpop.f32.mrb[5].mxu1 }
 0x21c   :  { %v692_v38 = vpop.f32.mrb[6].mxu0  ;;  %v763_v39 = vpop.f32.mrb[6].mxu1 }
 0x21d   :  { %v694_v40 = vpop.f32.mrb[7].mxu0  ;;  %v1951_v41 = vpop.f32.mrb[7].mxu1 }
 0x224   :  { %v871_v42 = vpop.f32.mrb[8].mxu0  ;;  %v942_v43 = vpop.f32.mrb[8].mxu1 }
 0x225   :  { %v873_v44 = vpop.f32.mrb[9].mxu0  ;;  %v1962_v45 = vpop.f32.mrb[9].mxu1 }
 0x22c   :  { %v1050_v46 = vpop.f32.mrb[10].mxu0  ;;  %v1121_v1 = vpop.f32.mrb[10].mxu1 }
 0x22d   :  { %v1052_v47 = vpop.f32.mrb[11].mxu0  ;;  %v1973_v0 = vpop.f32.mrb[11].mxu1 }
 0x234   :  { %v1229_v48 = vpop.f32.mrb[12].mxu0  ;;  %v1300_v49 = vpop.f32.mrb[12].mxu1 }
 0x235   :  { %v1231_v50 = vpop.f32.mrb[13].mxu0  ;;  %v1984_v51 = vpop.f32.mrb[13].mxu1 }
 0x23c   :  { %v1408_v52 = vpop.f32.mrb[14].mxu0  ;;  %v1479_v53 = vpop.f32.mrb[14].mxu1 }
 0x23d   :  { %v1410_v54 = vpop.f32.mrb[15].mxu0  ;;  %v1995_v55 = vpop.f32.mrb[15].mxu1 }
 0x244   :  { %v1587_v56 = vpop.f32.mrb[16].mxu0  ;;  %v1658_v57 = vpop.f32.mrb[16].mxu1 }
 0x245   :  { %v1589_v58 = vpop.f32.mrb[17].mxu0  ;;  %v2006_v59 = vpop.f32.mrb[17].mxu1 }
 0x24c   :  { %v1777_v61 = vpop.f32.mrb[18].mxu0 }
 0x24d   :  { %v1778_v62 = vadd.f32 %v1856_v60, %v1777_v61  ;;  %v2017_v63 = vpop.f32.mrb[19].mxu0 }
 0x24f   :  { %1781 = vmax.xlane.f32.xlu0 %v1778_v62 }
 0x2dc   :  { %v1782_v2 = vpop.xlane.xlu0 %1781 }
 0x2dd   :  { %v1783_v3 = vsub.f32 %v1778_v62, %v1782_v2 }
 0x2df   :  { %v1784_v4 = vmul.f32 1.442695, %v1783_v3 }
 0x2e1   :  { %2169 = vpow2.f32 %v1784_v4 }
 0x2eb   :  { %v2170_v5 = vpop.eup %2169 }
 0x2ec   :  { %1786 = vadd.xlane.f32.xlu0 %v2170_v5 }
 0x2ed   :  { %2228 = shalt.err (!%p2225_p6)
}
 0x2ee   :  { %s2229_s29 = scalar_lea.hbm %s2548_s5, 16 }
 0x2ef   :  { %p2230_p7 = scmp.ne.s32.totalorder %s2548_s5, %s2229_s29  ;;  %p2233_p8 = scmp.lt.u32.totalorder %s2229_s29, %s2548_s5 }
 0x2f1   :  { %p2235_p9 = pnand %p2233_p8, %p2230_p7 }
 0x2f3   :  { %2238 = shalt.err (!%p2235_p9)
}
 0x2f4   :  { %1811 = dma.vmem_to_hbm [thread:$0]  %s1809_s25, 16, %s2548_s5, [#allocation11]  }
 0x2f5   :  { %s2277_s11 = smov [#allocation9]  }
 0x2f6   :  { %s1798_s12 = sshll.u32 %s2277_s11, 4  ;;  %s1799_s12 = int_to_ptr.vmem [resolvable:$true] %s1798_s12 }
 0x2f7   :  { %s2239_s13 = scalar_lea.vmem %s1799_s12, 128  ;;  %p2244_p11 = scmp.lt.s32.totalorder %s1799_s12, %s1799_s12 }
 0x2f8   :  { %p2240_p10 = scmp.ne.s32.totalorder %s1799_s12, %s2239_s13  ;;  %p2245_p12 = scmp.lt.s32.totalorder %s2239_s13, %s2239_s13 }
 0x2fa   :  { %p2246_p13 = por %p2245_p12, %p2244_p11 }
 0x2fc   :  { %p2247_p0 = pnand %p2246_p13, %p2240_p10 }
 0x379   :  { %v1787_v6 = vpop.xlane.xlu0 %1786 }
 0x37a   :  { %2171 = vlog2.f32 %v1787_v6 }
 0x384   :  { %v2172_v7 = vpop.eup %2171 }
 0x385   :  { %v1789_v8 = vmul.f32 0.6931472, %v2172_v7 }
 0x387   :  { %v1790_v9 = vsub.f32 %v1783_v3, %v1789_v8 }
 0x389   :  { %1791 = vst [vmem:[#allocation9] sm:$0xff] %v1790_v9 }
 0x38a   :  { %2250 = shalt.err (!%p2247_p0)
}
 0x38b   :  { %s2251_s5 = scalar_lea.hbm %s2547_s4, 128 }
 0x38c   :  { %p2252_p1 = scmp.ne.s32.totalorder %s2547_s4, %s2251_s5  ;;  %p2255_p2 = scmp.lt.u32.totalorder %s2251_s5, %s2547_s4 }
 0x38e   :  { %p2257_p3 = pnand %p2255_p2, %p2252_p1 }
 0x390   :  { %2260 = shalt.err (!%p2257_p3)
}
 0x391   :  { %1801 = dma.vmem_to_hbm [thread:$0]  %s1799_s12, 128, %s2547_s4, [#allocation6]  }
 0x392   :  { %2265 = dma.done.wait [#allocation6], 128  }
 0x393   :  { %2266 = vsyncadd [#allocation6], 4294967168 }
 0x394   :  { %2267 = dma.done.wait [#allocation11], 16  }
 0x395   :  { %2268 = vsyncadd [#allocation11], 4294967280 }
 0x396   :  { %1818 = vsyncpa [#allocation5], 1 }
 0x397   :  { %1819 = vsyncpa [#allocation8], 1 }
 0x398   :  { %1820 = vsyncpa [#allocation6], 1 }
 0x399   :  { %1821 = vsyncpa [#allocation11], 1 }

</bundles_post_ra>
